<compile_context>
chip_gen: v7x
topology: tpu7x:2x2x1
jax: 0.10.0
libtpu: 0.0.40
codegen_flags: <defaults>
</compile_context>

<pallas_src>
import numpy as np
import jax
import jax.numpy as jnp
from jax.experimental import pallas as pl
from jax.experimental.pallas import tpu as pltpu

GAIN = 2.0 ** 0.5
LRELU_SLOPE = 0.2
PN_EPS = 1e-8

_CPARAMS = pltpu.CompilerParams(dimension_semantics=("arbitrary",))


def _lrelu(x):
    return jnp.where(x >= 0, x, LRELU_SLOPE * x)


def _pixel_norm(x):
    return x * jax.lax.rsqrt(jnp.mean(x * x, axis=-1, keepdims=True) + PN_EPS)


def _full_spec(shape):
    n = len(shape)
    return pl.BlockSpec(tuple(shape), lambda i, _n=n: (0,) * _n)


# --------------------------------------------------------------------------
# Kernel 1: latent -> 4x4 feature map (equalized "convT", pixelnorm on z),
# whole batch in one block, bf16 matmul operands.
# --------------------------------------------------------------------------
def initial_dense(z, w_bf16, b, scale):
    B, L = z.shape
    F = w_bf16.shape[1]

    def kernel(z_ref, w_ref, b_ref, o_ref):
        zz = _pixel_norm(z_ref[...]).astype(jnp.bfloat16)
        o_ref[...] = (jnp.dot(zz, w_ref[...], preferred_element_type=jnp.float32)
                      * scale + b_ref[...])

    return pl.pallas_call(
        kernel,
        out_shape=jax.ShapeDtypeStruct((B, F), jnp.float32),
        grid=(1,),
        in_specs=[_full_spec((B, L)), _full_spec((L, F)), _full_spec((1, F))],
        out_specs=_full_spec((B, F)),
        compiler_params=_CPARAMS,
    )(z, w_bf16, b)


# --------------------------------------------------------------------------
# Kernel 2: equalized 3x3 conv (stride 1, zero pad 1), optional pre/post
# leaky-relu + pixelnorm, optional second (split-K) input.  Padding is built
# in-kernel into a flat VMEM scratch; conv = 9 shifted full-slab matmuls with
# M = B*(H+2)*(W+2) rows on the MXU.
# --------------------------------------------------------------------------
def equalized_conv3x3(xs, ws, b, scale, *, pre_act, post_act):
    xs, ws = list(xs), list(ws)
    n_in = len(xs)
    B, H, W, _ = map(int, xs[0].shape)
    Cout = int(ws[0].shape[-1])
    Hp, Wp = H + 2, W + 2
    M = B * Hp * Wp                    # rows of the padded matmul slab
    ROWS = M + 3 * Wp                  # tail padding keeps shifted loads in-bounds
    cins = [int(x.shape[-1]) for x in xs]

    def kernel(*refs):
        x_refs = refs[:n_in]
        w_refs = refs[n_in:2 * n_in]
        b_ref = refs[2 * n_in]
        o_ref = refs[2 * n_in + 1]
        acc_ref = refs[2 * n_in + 2]
        pad_refs = refs[2 * n_in + 3:]

        # Build zero-padded, batch-concatenated, row-major flat copies in VMEM.
        for xi in range(n_in):
            pr = pad_refs[xi]
            pr[...] = jnp.zeros_like(pr)
            for bb in range(B):
                for h in range(H):
                    row = x_refs[xi][bb, h]                      # (W, Ci) f32
                    if pre_act:
                        row = _pixel_norm(_lrelu(row))
                    pr[pl.ds((bb * Hp + 1 + h) * Wp + 1, W), :] = row

        # 9 shifted full-slab matmuls per input (split-K over the inputs).
        acc_ref[...] = jnp.zeros_like(acc_ref)
        for xi in range(n_in):
            for ky in range(3):
                for kx in range(3):
                    lhs = pad_refs[xi][pl.ds(ky * Wp + kx, M), :].astype(jnp.bfloat16)
                    acc_ref[...] += jnp.dot(lhs, w_refs[xi][ky, kx],
                                            preferred_element_type=jnp.float32)

        out = acc_ref[...] * scale + b_ref[...]
        if post_act:
            out = _pixel_norm(_lrelu(out))
        acc_ref[...] = out

        # Extract the valid H x W rows (drop the padding ring / garbage rows).
        for bb in range(B):
            for h in range(H):
                o_ref[bb, h] = acc_ref[pl.ds((bb * Hp + h) * Wp, W), :]

    in_specs = ([_full_spec(x.shape) for x in xs]
                + [_full_spec(w.shape) for w in ws]
                + [_full_spec((1, Cout))])
    scratch = ([pltpu.VMEM((M, Cout), jnp.float32)]
               + [pltpu.VMEM((ROWS, c), jnp.float32) for c in cins])

    return pl.pallas_call(
        kernel,
        out_shape=jax.ShapeDtypeStruct((B, H, W, Cout), jnp.float32),
        grid=(1,),
        in_specs=in_specs,
        out_specs=_full_spec((B, H, W, Cout)),
        scratch_shapes=scratch,
        compiler_params=_CPARAMS,
    )(*xs, *ws, b.reshape(1, Cout))


# --------------------------------------------------------------------------
# Kernel 3: equalized 1x1 conv (to-RGB) with split-K over (features, cond),
# computed as one matmul with M = B*H*W (whole batch folded).
# --------------------------------------------------------------------------
def equalized_conv1x1(xs, ws, b, scale):
    xs, ws = list(xs), list(ws)
    n_in = len(xs)
    B, H, W, _ = map(int, xs[0].shape)
    Cout = int(ws[0].shape[-1])
    M = B * H * W
    flats = [x.reshape(M, int(x.shape[-1])) for x in xs]     # free XLA reshapes

    def kernel(*refs):
        x_refs = refs[:n_in]
        w_refs = refs[n_in:2 * n_in]
        b_ref = refs[2 * n_in]
        o_ref = refs[2 * n_in + 1]
        acc = jnp.zeros((M, Cout), jnp.float32)
        for xi in range(n_in):
            acc = acc + jnp.dot(x_refs[xi][...].astype(jnp.bfloat16),
                                w_refs[xi][...],
                                preferred_element_type=jnp.float32)
        o_ref[...] = acc * scale + b_ref[...]

    out = pl.pallas_call(
        kernel,
        out_shape=jax.ShapeDtypeStruct((M, Cout), jnp.float32),
        grid=(1,),
        in_specs=([_full_spec(f.shape) for f in flats]
                  + [_full_spec(w.shape) for w in ws]
                  + [_full_spec((1, Cout))]),
        out_specs=_full_spec((M, Cout)),
        compiler_params=_CPARAMS,
    )(*flats, *ws, b.reshape(1, Cout))
    return out.reshape(B, H, W, Cout)


# --------------------------------------------------------------------------
# Kernel 4: bilinear 2x upsample, align_corners=False (PyTorch semantics).
# Takes several same-resolution inputs (features + cond map) and upsamples
# them in one call; whole batch folded into the block.
# --------------------------------------------------------------------------
def _bilinear_taps(out_len, in_len):
    taps = []
    for i in range(out_len):
        src = max((i + 0.5) * in_len / out_len - 0.5, 0.0)
        lo = min(int(np.floor(src)), in_len - 1)
        hi = min(lo + 1, in_len - 1)
        frac = src - lo
        taps.append((lo, hi, float(1.0 - frac), float(frac)))
    return taps


def upsample2x_bilinear(xs):
    xs = list(xs)
    n_in = len(xs)
    B, H, W, _ = map(int, xs[0].shape)
    cs = [int(x.shape[-1]) for x in xs]
    taps_h = _bilinear_taps(2 * H, H)
    taps_w = _bilinear_taps(2 * W, W)

    def kernel(*refs):
        x_refs = refs[:n_in]
        o_refs = refs[n_in:2 * n_in]
        t_refs = refs[2 * n_in:]
        for xi in range(n_in):
            xr, orf, tr = x_refs[xi], o_refs[xi], t_refs[xi]
            for r, (lo, hi, wl, wh) in enumerate(taps_h):
                tr[:, r] = wl * xr[:, lo] + wh * xr[:, hi]                 # (B, W, C)
            for q, (lo, hi, wl, wh) in enumerate(taps_w):
                orf[:, :, q, :] = wl * tr[:, :, lo, :] + wh * tr[:, :, hi, :]

    outs = pl.pallas_call(
        kernel,
        out_shape=tuple(jax.ShapeDtypeStruct((B, 2 * H, 2 * W, c), jnp.float32)
                        for c in cs),
        grid=(1,),
        in_specs=[_full_spec(x.shape) for x in xs],
        out_specs=tuple(_full_spec((B, 2 * H, 2 * W, c)) for c in cs),
        scratch_shapes=[pltpu.VMEM((B, 2 * H, W, c), jnp.float32) for c in cs],
        compiler_params=_CPARAMS,
    )(*xs)
    if not isinstance(outs, (tuple, list)):
        outs = (outs,)
    return list(outs)


# --------------------------------------------------------------------------
# Kernel 5: fused [bilinear 2x upsample of prev RGB] + fade-in blend.
# alpha lives in SMEM so varying it does not retrace/recompile.
# --------------------------------------------------------------------------
def fade_in_upsample(alpha, curr_rgb, prev_rgb):
    B, H2, W2, C = map(int, curr_rgb.shape)
    H, W = int(prev_rgb.shape[1]), int(prev_rgb.shape[2])
    assert H2 == 2 * H and W2 == 2 * W
    taps_h = _bilinear_taps(H2, H)
    taps_w = _bilinear_taps(W2, W)
    alpha_arr = jnp.asarray(alpha, jnp.float32).reshape(1)

    def kernel(a_ref, c_ref, p_ref, o_ref, t_ref, u_ref):
        a = a_ref[0]
        for r, (lo, hi, wl, wh) in enumerate(taps_h):
            t_ref[:, r] = wl * p_ref[:, lo] + wh * p_ref[:, hi]
        for q, (lo, hi, wl, wh) in enumerate(taps_w):
            u_ref[:, :, q, :] = wl * t_ref[:, :, lo, :] + wh * t_ref[:, :, hi, :]
        o_ref[...] = a * c_ref[...] + (1.0 - a) * u_ref[...]

    return pl.pallas_call(
        kernel,
        out_shape=jax.ShapeDtypeStruct((B, H2, W2, C), jnp.float32),
        grid=(1,),
        in_specs=[pl.BlockSpec(memory_space=pltpu.MemorySpace.SMEM),
                  _full_spec((B, H2, W2, C)),
                  _full_spec((B, H, W, C))],
        out_specs=_full_spec((B, H2, W2, C)),
        scratch_shapes=[pltpu.VMEM((B, H2, W, C), jnp.float32),
                        pltpu.VMEM((B, H2, W2, C), jnp.float32)],
        compiler_params=_CPARAMS,
    )(alpha_arr, curr_rgb, prev_rgb)


# --------------------------------------------------------------------------
# Generator (mirrors the PyTorch module's __init__ / forward structure).
# Conv / to-RGB weights are stored pre-split along Cin (feature part / cond
# part) so the channel-concat is computed as split-K inside the kernels.
# --------------------------------------------------------------------------
class PallasGenerator:
    def __init__(self, out_size, latent_dim, enc_channels, img_channels=3,
                 concat_map=True, key=None):
        assert out_size <= 64, "IMG_SIZE is atmost 64 x 64"
        self.start_size = 4
        possible_channels = [512, 256, 128, 64, 32]
        num_blocks = int(np.log2(out_size / self.start_size)) + 1
        self.channels = possible_channels[-num_blocks:]
        self.enc_channels = list(enc_channels) if concat_map else [0] * num_blocks
        self.enlarged_channels = [e + g for e, g in
                                  zip(self.enc_channels, self.channels)]
        self.concat_map = concat_map
        self.latent_dim = latent_dim
        self.img_channels = img_channels

        if key is None:
            key = jax.random.PRNGKey(0)
        keys = iter(jax.random.split(key, 128))

        def normal(shape):
            return jax.random.normal(next(keys), shape,
                                     dtype=jnp.float32).astype(jnp.bfloat16)

        s = self.start_size
        c0e, c0 = self.enlarged_channels[0], self.channels[0]

        # InitialGBlock: equalized convT latent -> c0e @ 4x4, then conv3x3 c0e -> c0.
        self.w_dense = normal((latent_dim, s * s * c0e))
        self.b_dense = jnp.zeros((1, s * s * c0e), jnp.float32)
        self.s_dense = float(GAIN / np.sqrt(latent_dim))

        self.w_init = normal((3, 3, c0e, c0))
        self.b_init = jnp.zeros((c0,), jnp.float32)
        self.s_init = float(GAIN / np.sqrt(c0e * 9))

        def rgb_split(cin_x, cin_c):
            wx = normal((cin_x, img_channels))
            wc = normal((cin_c, img_channels)) if cin_c > 0 else None
            return wx, wc

        # initial to-RGB over (conv-out channels[0]) + (enc[0]) = enlarged[0]
        self.rgb0_wx, self.rgb0_wc = rgb_split(c0, self.enc_channels[0])
        self.rgb0_b = jnp.zeros((img_channels,), jnp.float32)
        self.rgb0_s = float(GAIN / np.sqrt(c0e))

        self.syn_params, self.rgb_params = [], []
        for idx in range(num_blocks - 1):
            cx, cc = self.channels[idx], self.enc_channels[idx]
            cout = self.channels[idx + 1]
            wx = normal((3, 3, cx, cout))
            wc = normal((3, 3, cc, cout)) if cc > 0 else None
            self.syn_params.append(
                (wx, wc, jnp.zeros((cout,), jnp.float32),
                 float(GAIN / np.sqrt(self.enlarged_channels[idx] * 9))))
            rx, rc = rgb_split(self.channels[idx + 1], self.enc_channels[idx + 1])
            self.rgb_params.append(
                (rx, rc, jnp.zeros((img_channels,), jnp.float32),
                 float(GAIN / np.sqrt(self.enlarged_channels[idx + 1]))))

    def _to_rgb(self, x, cond, wx, wc, b, s):
        xs, ws = [x], [wx]
        if self.concat_map and wc is not None:
            xs.append(cond)
            ws.append(wc)
        return equalized_conv1x1(xs, ws, b, s)

    def __call__(self, latent_vector, alpha, steps, cond_feature_maps):
        assert steps <= len(self.syn_params)
        B = latent_vector.shape[0]
        x = initial_dense(latent_vector, self.w_dense, self.b_dense, self.s_dense)
        x = x.reshape(B, self.start_size, self.start_size, self.enlarged_channels[0])
        x = equalized_conv3x3([x], [self.w_init], self.b_init, self.s_init,
                              pre_act=True, post_act=True)
        cond = cond_feature_maps[-1] if self.concat_map else None

        curr_rgb = None
        if steps <= 1:
            curr_rgb = self._to_rgb(x, cond, self.rgb0_wx, self.rgb0_wc,
                                    self.rgb0_b, self.rgb0_s)
        if steps == 0:
            return curr_rgb

        prev_rgb = None
        for idx in range(steps):
            wx, wc, b, s = self.syn_params[idx]
            if self.concat_map:
                x_up, c_up = upsample2x_bilinear([x, cond])
                x = equalized_conv3x3([x_up, c_up], [wx, wc], b, s,
                                      pre_act=False, post_act=True)
            else:
                (x_up,) = upsample2x_bilinear([x])
                x = equalized_conv3x3([x_up], [wx], b, s,
                                      pre_act=False, post_act=True)
            cond = cond_feature_maps[-(idx + 2)] if self.concat_map else None
            prev_rgb = curr_rgb
            if idx >= steps - 2:          # earlier RGB outputs are never used
                rx, rc, rb, rs = self.rgb_params[idx]
                curr_rgb = self._to_rgb(x, cond, rx, rc, rb, rs)
        return fade_in_upsample(alpha, curr_rgb, prev_rgb)


if __name__ == "__main__":
    out_size = 8          # 2 stages: channels = [64, 32], enlarged = [80, 40]
    latent_dim = 32
    enc_channels = [16, 8]
    B = 2
    steps = 1
    alpha = 0.7

    gen = PallasGenerator(out_size, latent_dim, enc_channels, img_channels=3,
                          concat_map=True, key=jax.random.PRNGKey(1))

    key = jax.random.PRNGKey(0)
    k_lat, k_c0, k_c1 = jax.random.split(key, 3)
    latent = jax.random.normal(k_lat, (B, latent_dim), dtype=jnp.float32)
    # cond_feature_maps indexed from the end: [-1] is the 4x4 map, [-2] the 8x8 map.
    cond_maps = [
        jax.random.normal(k_c1, (B, 8, 8, enc_channels[1]), dtype=jnp.float32),  # [-2]
        jax.random.normal(k_c0, (B, 4, 4, enc_channels[0]), dtype=jnp.float32),  # [-1]
    ]

    out = gen(latent, alpha, steps, cond_maps)
    out = jax.block_until_ready(out)
    assert out.shape == (B, out_size, out_size, 3), out.shape
    assert bool(jnp.isfinite(out).all())
    print("KERNEL_OK")
</pallas_src>

<mosaic_0001>
module attributes {stable_mosaic.version = 11 : i64} {
  func.func @kernel(%arg0: i32, %arg1: memref<2x32xf32, #tpu.memory_space<vmem>>, %arg2: memref<32x1280xbf16, #tpu.memory_space<vmem>>, %arg3: memref<1x1280xf32, #tpu.memory_space<vmem>>, %arg4: memref<2x1280xf32, #tpu.memory_space<vmem>>) attributes {dimension_semantics = [#tpu.dimension_semantics<arbitrary>], iteration_bounds = array<i64: 1>, scalar_prefetch = 0 : i64, scratch_operands = 0 : i64, tpu.core_type = #tpu.core_type<tc>, window_params = [{pipeline_mode = #tpu.pipeline_mode<synchronous>, transform_indices = @transform_0, window_bounds = array<i64: 2, 32>}, {pipeline_mode = #tpu.pipeline_mode<synchronous>, transform_indices = @transform_1, window_bounds = array<i64: 32, 1280>}, {pipeline_mode = #tpu.pipeline_mode<synchronous>, transform_indices = @transform_2, window_bounds = array<i64: 1, 1280>}, {pipeline_mode = #tpu.pipeline_mode<synchronous>, transform_indices = @transform_3, window_bounds = array<i64: 2, 1280>}]} {
    %c0 = arith.constant 0 : index
    %c0_0 = arith.constant 0 : index
    %0 = vector.load %arg1[%c0, %c0_0] : memref<2x32xf32, #tpu.memory_space<vmem>>, vector<2x32xf32>
    %1 = arith.mulf %0, %0 : vector<2x32xf32>
    %cst = arith.constant dense<0.000000e+00> : vector<2xf32>
    %2 = vector.multi_reduction <add>, %1, %cst [1] : vector<2x32xf32> to vector<2xf32>
    %3 = vector.shape_cast %2 : vector<2xf32> to vector<2x1xf32>
    %cst_1 = arith.constant 3.200000e+01 : f32
    %4 = vector.broadcast %cst_1 : f32 to vector<2x1xf32>
    %5 = arith.divf %3, %4 : vector<2x1xf32>
    %cst_2 = arith.constant 9.99999993E-9 : f32
    %6 = vector.broadcast %cst_2 : f32 to vector<2x1xf32>
    %7 = arith.addf %5, %6 : vector<2x1xf32>
    %8 = math.rsqrt %7 : vector<2x1xf32>
    %9 = vector.broadcast %8 : vector<2x1xf32> to vector<2x32xf32>
    %10 = arith.mulf %0, %9 : vector<2x32xf32>
    %11 = arith.truncf %10 : vector<2x32xf32> to vector<2x32xbf16>
    %c0_3 = arith.constant 0 : index
    %c0_4 = arith.constant 0 : index
    %12 = vector.load %arg2[%c0_3, %c0_4] : memref<32x1280xbf16, #tpu.memory_space<vmem>>, vector<32x1280xbf16>
    %cst_5 = arith.constant dense<0.000000e+00> : vector<2x1280xf32>
    %13 = tpu.matmul %11, %12, %cst_5 {dimension_numbers = #tpu.dot_dimension_numbers<[1], [0], [0], [1], [0, 0, 1, 1], [], []>} : vector<2x32xbf16>, vector<32x1280xbf16>, vector<2x1280xf32> -> vector<2x1280xf32>
    %cst_6 = arith.constant 2.500000e-01 : f32
    %14 = vector.broadcast %cst_6 : f32 to vector<2x1280xf32>
    %15 = arith.mulf %13, %14 : vector<2x1280xf32>
    %c0_7 = arith.constant 0 : index
    %c0_8 = arith.constant 0 : index
    %16 = vector.load %arg3[%c0_7, %c0_8] : memref<1x1280xf32, #tpu.memory_space<vmem>>, vector<1x1280xf32>
    %17 = vector.broadcast %16 : vector<1x1280xf32> to vector<2x1280xf32>
    %18 = arith.addf %15, %17 : vector<2x1280xf32>
    %c0_9 = arith.constant 0 : index
    %c0_10 = arith.constant 0 : index
    %19 = vector.load %arg4[%c0_9, %c0_10] : memref<2x1280xf32, #tpu.memory_space<vmem>>, vector<2x1280xf32>
    tpu.vector_store %arg4[%c0_9, %c0_10], %18 {strides = array<i32>} : memref<2x1280xf32, #tpu.memory_space<vmem>>, vector<2x1280xf32>,
    return
  }
  func.func @transform_0(%arg0: i32) -> (i32, i32) {
    %c0_i32 = arith.constant 0 : i32
    %c0_i32_0 = arith.constant 0 : i32
    %c0_i32_1 = arith.constant 0 : i32
    return %c0_i32, %c0_i32_0 : i32, i32
  }
  func.func @transform_1(%arg0: i32) -> (i32, i32) {
    %c0_i32 = arith.constant 0 : i32
    %c0_i32_0 = arith.constant 0 : i32
    %c0_i32_1 = arith.constant 0 : i32
    return %c0_i32, %c0_i32_0 : i32, i32
  }
  func.func @transform_2(%arg0: i32) -> (i32, i32) {
    %c0_i32 = arith.constant 0 : i32
    %c0_i32_0 = arith.constant 0 : i32
    %c0_i32_1 = arith.constant 0 : i32
    return %c0_i32, %c0_i32_0 : i32, i32
  }
  func.func @transform_3(%arg0: i32) -> (i32, i32) {
    %c0_i32 = arith.constant 0 : i32
    %c0_i32_0 = arith.constant 0 : i32
    %c0_i32_1 = arith.constant 0 : i32
    return %c0_i32, %c0_i32_0 : i32, i32
  }
}

</mosaic_0001>

<bundles_post_ra>
// kernel: tpu_custom_call.1
= control target key start
LH: loop header
LB: loop body
LE: loop exit
PB: predicated region body
PF: predicated region fallthrough
CT: control target
= control target key end

     0   :  { %8 = vsyncpa [#allocation3], 0  ;;  %s794_s0 = inlined_call_operand.hbm [shape: f32[2,32], index: 0, kind: input, shape index: {}]   ;;  %s795_s1 = inlined_call_operand.hbm [shape: bf16[32,1280], index: 1, kind: input, shape index: {}]   ;;  %s796_s2 = inlined_call_operand.hbm [shape: f32[1,1280], index: 2, kind: input, shape index: {}]   ;;  %s797_s3 = inlined_call_operand.hbm [shape: f32[2,1280], index: 3, kind: output, shape index: {}]  }
   0x1   :  { %9 = vsyncpa [#allocation6], 0 }
   0x2   :  { %10 = vsyncpa [#allocation4], 0  ;;  %s702_s12 = smov [#allocation5]   ;;  %s608_s16 = scalar_lea.hbm %s795_s1, 2560 }
   0x3   :  { %s26_s13 = sshll.u32 %s702_s12, 4  ;;  %p609_p0 = scmp.ne.s32.totalorder %s795_s1, %s608_s16  ;;  %s27_s13 = int_to_ptr.vmem [resolvable:$true] %s26_s13 }
   0x4   :  { %p612_p1 = scmp.lt.u32.totalorder %s608_s16, %s795_s1 }
   0x6   :  { %p614_p2 = pnand %p612_p1, %p609_p0 }
   0x8   :  { %617 = shalt.err (!%p614_p2)
}
   0x9   :  { %s618_s21 = scalar_lea.vmem %s27_s13, 2560  ;;  %p623_p4 = scmp.lt.s32.totalorder %s27_s13, %s27_s13 }
   0xa   :  { %p619_p3 = scmp.ne.s32.totalorder %s27_s13, %s618_s21  ;;  %p624_p5 = scmp.lt.s32.totalorder %s618_s21, %s618_s21 }
   0xc   :  { %p625_p6 = por %p624_p5, %p623_p4 }
   0xe   :  { %p626_p7 = pnand %p625_p6, %p619_p3 }
  0x10   :  { %629 = shalt.err (!%p626_p7)
}
  0x11   :  { %s703_s22 = smov 640   ;;  %s704_s23 = smov 40  }
  0x12   :  { %32 = dma.hbm_to_vmem [thread:$0]  %s795_s1, 2560, %s27_s13, [#allocation6], %s703_s22, %s703_s22, %s704_s23  }
  0x13   :  { %s705_s26 = smov [#allocation2]   ;;  %s706_s28 = smov [#allocation7]  }
  0x14   :  { %s17_s27 = sshll.u32 %s705_s26, 4  ;;  %s39_s29 = sshll.u32 %s706_s28, 4  ;;  %s18_s27 = int_to_ptr.vmem [resolvable:$true] %s17_s27  ;;  %s40_s29 = int_to_ptr.vmem [resolvable:$true] %s39_s29 }
  0x15   :  { %s630_s5 = scalar_lea.hbm %s794_s0, 32 }
  0x16   :  { %p631_p8 = scmp.ne.s32.totalorder %s794_s0, %s630_s5  ;;  %p634_p9 = scmp.lt.u32.totalorder %s630_s5, %s794_s0 }
  0x18   :  { %p636_p10 = pnand %p634_p9, %p631_p8 }
  0x1a   :  { %639 = shalt.err (!%p636_p10)
}
  0x1b   :  { %s640_s1 = scalar_lea.vmem %s18_s27, 32  ;;  %p645_p12 = scmp.lt.s32.totalorder %s18_s27, %s18_s27 }
  0x1c   :  { %p641_p11 = scmp.ne.s32.totalorder %s18_s27, %s640_s1  ;;  %p646_p13 = scmp.lt.s32.totalorder %s640_s1, %s640_s1 }
  0x1e   :  { %p647_p0 = por %p646_p13, %p645_p12 }
  0x20   :  { %p648_p1 = pnand %p647_p0, %p641_p11 }
  0x22   :  { %651 = shalt.err (!%p648_p1)
}
  0x23   :  { %20 = dma.hbm_to_vmem [thread:$0]  %s794_s0, 32, %s18_s27, [#allocation3]  }
  0x24   :  { %s652_s14 = scalar_lea.hbm %s796_s2, 160 }
  0x25   :  { %p653_p2 = scmp.ne.s32.totalorder %s796_s2, %s652_s14  ;;  %p656_p3 = scmp.lt.u32.totalorder %s652_s14, %s796_s2 }
  0x27   :  { %p658_p4 = pnand %p656_p3, %p653_p2 }
  0x29   :  { %661 = shalt.err (!%p658_p4)
}
  0x2a   :  { %s662_s19 = scalar_lea.vmem %s40_s29, 160  ;;  %p667_p6 = scmp.lt.s32.totalorder %s40_s29, %s40_s29 }
  0x2b   :  { %p663_p5 = scmp.ne.s32.totalorder %s40_s29, %s662_s19  ;;  %p668_p7 = scmp.lt.s32.totalorder %s662_s19, %s662_s19 }
  0x2d   :  { %p669_p8 = por %p668_p7, %p667_p6 }
  0x2f   :  { %p670_p9 = pnand %p669_p8, %p663_p5 }
  0x31   :  { %673 = shalt.err (!%p670_p9)
}
  0x32   :  { %42 = dma.hbm_to_vmem [thread:$0]  %s796_s2, 160, %s40_s29, [#allocation6]  }
  0x33   :  { %696 = dma.done.wait [#allocation3], 32  }
  0x34   :  { %697 = vsyncadd [#allocation3], 4294967264 }
  0x35   :  { %698 = dma.done.wait [#allocation6], 2720  }
  0x36   :  { %699 = vsyncadd [#allocation6], 4294964576  ;;  %v53_v0 = vld [vmem:[#allocation2] sm:$0x3]  ;;  %vm55_vm0 = vcmask 254976   ;;  %v707_v12 = vmov 0   ;;  %v408_v30 = vlaneseq }
  0x37   :  { %v54_v1 = vmul.f32 %v53_v0, %v53_v0  ;;  %v576_v3 = vld [vmem:[#allocation5 + $0x4] ss:$40 sps:$4 sm:$0xff]   ;;  %v578_v5 = vld [vmem:[#allocation5] ss:$40 sps:$4 sm:$0xff]   ;;  %v582_v7 = vld [vmem:[#allocation5 + $0x54] ss:$40 sps:$4 sm:$0xff]   ;;  %221 = vmatprep.mubr.bf16.mxu0 %v707_v12  ;;  %262 = vmatprep.mubr.bf16.mxu1 %v707_v12 }
  0x38   :  { %v579_v4 = vld [vmem:[#allocation5 + $0xc] ss:$40 sps:$4 sm:$0xff]   ;;  %v581_v6 = vld [vmem:[#allocation5 + $0x8] ss:$40 sps:$4 sm:$0xff]   ;;  %189 = vmatprep.subr.bf16.mxu0 %v576_v3  ;;  %v585_v8 = vld [vmem:[#allocation5 + $0x5c] ss:$40 sps:$4 sm:$0xff]  }
  0x39   :  { %v56_v2 = vsel %vm55_vm0, %v54_v1, 0.0  ;;  %230 = vmatprep.subr.bf16.mxu1 %v579_v4  ;;  %190 = vmatpush1.bf16.msra.mxu0 %v578_v5  ;;  %v584_v9 = vld [vmem:[#allocation5 + $0x50] ss:$40 sps:$4 sm:$0xff]   ;;  %v590_v11 = vld [vmem:[#allocation5 + $0x14] ss:$40 sps:$4 sm:$0xff]   ;;  %vm185_vm1 = vcmask 261120  }
  0x3a   :  { %57 = vadd.xlane.f32.xlu0 %v56_v2  ;;  %231 = vmatpush1.bf16.msra.mxu1 %v581_v6  ;;  %v587_v10 = vld [vmem:[#allocation5 + $0x58] ss:$40 sps:$4 sm:$0xff]   ;;  %v593_v13 = vld [vmem:[#allocation5 + $0x1c] ss:$40 sps:$4 sm:$0xff]   ;;  %v599_v23 = vld [vmem:[#allocation5 + $0x6c] ss:$40 sps:$4 sm:$0xff]  }
  0x3b   :  { %191 = vmatprep.subr.bf16.mxu0 %v582_v7  ;;  %232 = vmatprep.subr.bf16.mxu1 %v585_v8  ;;  %v588_v19 = vld [vmem:[#allocation5 + $0x10] ss:$40 sps:$4 sm:$0xff]   ;;  %v596_v22 = vld [vmem:[#allocation5 + $0x64] ss:$40 sps:$4 sm:$0xff]   ;;  %v594_v24 = vld [vmem:[#allocation5 + $0x60] ss:$40 sps:$4 sm:$0xff]  }
  0x3c   :  { %v591_v20 = vld [vmem:[#allocation5 + $0x18] ss:$40 sps:$4 sm:$0xff]   ;;  %v597_v25 = vld [vmem:[#allocation5 + $0x68] ss:$40 sps:$4 sm:$0xff]   ;;  %v602_v26 = vld [vmem:[#allocation5 + $0x24] ss:$40 sps:$4 sm:$0xff]  }
  0x3d   :  { %192 = vmatpush1.bf16.msra.mxu0 %v584_v9  ;;  %v600_v27 = vld [vmem:[#allocation5 + $0x20] ss:$40 sps:$4 sm:$0xff]   ;;  %v605_v28 = vld [vmem:[#allocation5 + $0x74] ss:$40 sps:$4 sm:$0xff]   ;;  %v603_v29 = vld [vmem:[#allocation5 + $0x70] ss:$40 sps:$4 sm:$0xff]  }
  0x3e   :  { %233 = vmatpush1.bf16.msra.mxu1 %v587_v10  ;;  %271 = vmatprep.subr.bf16.mxu0 %v590_v11  ;;  %v771_v31 = vshrl.u32 %v408_v30, 7  ;;  %v708_v32 = vmov 1983009808   ;;  %v404_v36 = vld [vmem:[#allocation7] sm:$0xff]  ;;  %s709_s2 = smov [#allocation8]  }
  0x3f   :  { %312 = vmatprep.subr.bf16.mxu1 %v593_v13  ;;  %v481_v33 = vunpack.c.l.s4 %v708_v32  ;;  %s532_s21 = sshll.u32 %s709_s2, 4  ;;  %s533_s21 = int_to_ptr.vmem [resolvable:$true] %s532_s21 }
  0x40   :  { %v410_v34 = vsub.s32 0, %v771_v31  ;;  %v418_v35 = vsub.s32 2, %v771_v31  ;;  %v414_v37 = vsub.s32 1, %v771_v31  ;;  %v422_v38 = vsub.s32 3, %v771_v31  ;;  %s674_s22 = scalar_lea.vmem %s533_s21, 320  ;;  %p679_p11 = scmp.lt.s32.totalorder %s533_s21, %s533_s21 }
  0x41   :  { %v482_v39 = vunpack.c.0.s8 %v481_v33  ;;  %v426_v59 = vsub.s32 4, %v771_v31  ;;  %v434_v60 = vsub.s32 6, %v771_v31  ;;  %v430_v63 = vsub.s32 5, %v771_v31  ;;  %p675_p10 = scmp.ne.s32.totalorder %s533_s21, %s674_s22  ;;  %p680_p12 = scmp.lt.s32.totalorder %s674_s22, %s674_s22 }
  0x42   :  { %v411_v40 = vrot.slane %v404_v36, %v410_v34  ;;  %v419_v41 = vrot.slane %v404_v36, %v418_v35  ;;  %v415_v44 = vrot.slane %v404_v36, %v414_v37  ;;  %v423_v45 = vrot.slane %v404_v36, %v422_v38 }
  0x43   :  { %v485_v51 = vsub.s32 %v482_v39, %v771_v31  ;;  %v427_v3 = vrot.slane %v404_v36, %v426_v59  ;;  %v435_v4 = vrot.slane %v404_v36, %v434_v60  ;;  %v431_v9 = vrot.slane %v404_v36, %v430_v63  ;;  %p681_p13 = por %p680_p12, %p679_p11 }
  0x45   :  { %p682_p0 = pnand %p681_p13, %p675_p10 }
  0xc7   :  { %v58_v14 = vpop.xlane.xlu0 %57 }
  0xc8   :  { %v60_v15 = vmul.f32 0.03125, %v58_v14 }
  0xca   :  { %v61_v16 = vadd.f32 1e-08, %v60_v15 }
  0xcc   :  { %606 = vrsqrt.f32 %v61_v16 }
  0xd6   :  { %v607_v17 = vpop.eup %606 }
  0xd7   :  { %v63_v18 = vmul.f32 %v607_v17, %v53_v0  ;;  %v438_v0 = vsub.s32 7, %v771_v31 }
  0xd9   :  { %v64_v21 = vpack.c.bf16 %v63_v18, %v63_v18  ;;  %v439_v10 = vrot.slane %v404_v36, %v438_v0 }
  0xdb   :  { %562 = vmatmul.mubr.msk.bf16.vlgmr.msra.gmra.mrb[0].mxu0 %vm185_vm1, %v64_v21  ;;  %563 = vmatmul.mubr.msk.bf16.vlgmr.msra.gmra.mrb[0].mxu1 %vm185_vm1, %v64_v21 }
  0xdc   :  { %272 = vmatpush1.bf16.msra.mxu0 %v588_v19  ;;  %313 = vmatpush1.bf16.msra.mxu1 %v591_v20 }
  0xdd   :  { %273 = vmatprep.subr.bf16.mxu0 %v596_v22  ;;  %314 = vmatprep.subr.bf16.mxu1 %v599_v23 }
  0xde   :  { %303 = vmatprep.mubr.bf16.mxu0 %v707_v12  ;;  %344 = vmatprep.mubr.bf16.mxu1 %v707_v12 }
  0xe0   :  { %274 = vmatpush1.bf16.msra.mxu0 %v594_v24  ;;  %315 = vmatpush1.bf16.msra.mxu1 %v597_v25 }
  0xe1   :  { %353 = vmatprep.subr.bf16.mxu0 %v602_v26  ;;  %v405_v26 = vld [vmem:[#allocation7 + $0x8] sm:$0x3] }
  0xe2   :  { %v447_v33 = vrot.slane %v405_v26, %v414_v37 }
  0xe3   :  { %564 = vmatmul.mubr.msk.bf16.vlgmr.msra.gmra.mrb[4].mxu0 %vm185_vm1, %v64_v21  ;;  %565 = vmatmul.mubr.msk.bf16.vlgmr.msra.gmra.mrb[4].mxu1 %vm185_vm1, %v64_v21 }
  0xe4   :  { %354 = vmatpush1.bf16.msra.mxu0 %v600_v27  ;;  %385 = vmatprep.mubr.bf16.mxu0 %v707_v12 }
  0xe5   :  { %355 = vmatprep.subr.bf16.mxu0 %v605_v28 }
  0xe8   :  { %356 = vmatpush1.bf16.msra.mxu0 %v603_v29  ;;  %v443_v29 = vrot.slane %v405_v26, %v410_v34 }
  0xeb   :  { %566 = vmatmul.mubr.msk.bf16.vlgmr.msra.gmra.mrb[8].mxu0 %vm185_vm1, %v64_v21 }
 0x1ae   :  { %v223_v42 = vpop.f32.mrb[0].mxu0  ;;  %v264_v43 = vpop.f32.mrb[0].mxu1 }
 0x1af   :  { %v394_v46 = vmul.f32 0.25, %v223_v42  ;;  %v396_v47 = vmul.f32 0.25, %v264_v43  ;;  %v225_v48 = vpop.f32.mrb[1].mxu0  ;;  %v266_v49 = vpop.f32.mrb[1].mxu1 }
 0x1b0   :  { %v395_v50 = vmul.f32 0.25, %v225_v48  ;;  %v397_v52 = vmul.f32 0.25, %v266_v49  ;;  %v227_v53 = vpop.f32.mrb[2].mxu0  ;;  %v268_v54 = vpop.f32.mrb[2].mxu1 }
 0x1b1   :  { %v458_v55 = vadd.f32 %v411_v40, %v394_v46  ;;  %v460_v56 = vadd.f32 %v419_v41, %v396_v47  ;;  %v228_v57 = vpop.f32.mrb[3].mxu0  ;;  %v269_v58 = vpop.f32.mrb[3].mxu1 }
 0x1b2   :  { %v459_v61 = vadd.f32 %v415_v44, %v395_v50  ;;  %v461_v62 = vadd.f32 %v423_v45, %v397_v52 }
 0x1b4   :  { %v478_v1 = vcombine.low %v458_v55, %v459_v61  ;;  %v479_v2 = vcombine.low %v460_v56, %v461_v62 }
 0x1b6   :  { %v486_v5 = vrot.slane %v478_v1, %v485_v51  ;;  %v493_v6 = vrot.slane %v479_v2, %v485_v51  ;;  %v305_v7 = vpop.f32.mrb[4].mxu0  ;;  %v346_v8 = vpop.f32.mrb[4].mxu1 }
 0x1b7   :  { %v398_v11 = vmul.f32 0.25, %v305_v7  ;;  %v400_v12 = vmul.f32 0.25, %v346_v8  ;;  %v307_v13 = vpop.f32.mrb[5].mxu0  ;;  %v348_v14 = vpop.f32.mrb[5].mxu1 }
 0x1b8   :  { %v399_v15 = vmul.f32 0.25, %v307_v13  ;;  %v401_v16 = vmul.f32 0.25, %v348_v14  ;;  %v309_v17 = vpop.f32.mrb[6].mxu0  ;;  %v350_v18 = vpop.f32.mrb[6].mxu1  ;;  %v494_v19 = vcombine.low %v486_v5, %v493_v6 }
 0x1b9   :  { %v462_v20 = vadd.f32 %v427_v3, %v398_v11  ;;  %v464_v21 = vadd.f32 %v435_v4, %v400_v12  ;;  %v310_v22 = vpop.f32.mrb[7].mxu0  ;;  %v351_v23 = vpop.f32.mrb[7].mxu1 }
 0x1ba   :  { %v463_v24 = vadd.f32 %v431_v9, %v399_v15  ;;  %v465_v25 = vadd.f32 %v439_v10, %v401_v16  ;;  %523 = vst [vmem:[#allocation8] sm:$0xff] %v494_v19 }
 0x1bc   :  { %v495_v27 = vcombine.low %v462_v20, %v463_v24  ;;  %v496_v28 = vcombine.low %v464_v21, %v465_v25 }
 0x1be   :  { %v503_v30 = vrot.slane %v495_v27, %v485_v51  ;;  %v510_v31 = vrot.slane %v496_v28, %v485_v51  ;;  %v387_v32 = vpop.f32.mrb[8].mxu0 }
 0x1bf   :  { %v402_v35 = vmul.f32 0.25, %v387_v32  ;;  %v389_v36 = vpop.f32.mrb[9].mxu0 }
 0x1c0   :  { %v403_v38 = vmul.f32 0.25, %v389_v36  ;;  %v391_v39 = vpop.f32.mrb[10].mxu0  ;;  %v511_v40 = vcombine.low %v503_v30, %v510_v31 }
 0x1c1   :  { %v466_v41 = vadd.f32 %v443_v29, %v402_v35  ;;  %v392_v42 = vpop.f32.mrb[11].mxu0 }
 0x1c2   :  { %v467_v43 = vadd.f32 %v447_v33, %v403_v38  ;;  %524 = vst [vmem:[#allocation8 + $0x8] sm:$0xff] %v511_v40 }
 0x1c4   :  { %v512_v44 = vcombine.low %v466_v41, %v467_v43 }
 0x1c6   :  { %567 = vst.sshfl [vmem:[#allocation8 + $0x10] sm:$0x33 pattern:$0x76325410] %v512_v44 }
 0x1c7   :  { %685 = shalt.err (!%p682_p0)
}
 0x1c8   :  { %s686_s25 = scalar_lea.hbm %s797_s3, 320 }
 0x1c9   :  { %p687_p1 = scmp.ne.s32.totalorder %s797_s3, %s686_s25  ;;  %p690_p2 = scmp.lt.u32.totalorder %s686_s25, %s797_s3 }
 0x1cb   :  { %p692_p3 = pnand %p690_p2, %p687_p1 }
 0x1cd   :  { %695 = shalt.err (!%p692_p3)
}
 0x1ce   :  { %535 = dma.vmem_to_hbm [thread:$0]  %s533_s21, 320, %s797_s3, [#allocation4]  }
 0x1cf   :  { %700 = dma.done.wait [#allocation4], 320  }
 0x1d0   :  { %701 = vsyncadd [#allocation4], 4294966976 }
 0x1d1   :  { %539 = vsyncpa [#allocation3], 1 }
 0x1d2   :  { %540 = vsyncpa [#allocation6], 1 }
 0x1d3   :  { %541 = vsyncpa [#allocation4], 1 }

</bundles_post_ra>
